<compile_context>
chip_gen: v7x
topology: tpu7x:2x2x1
jax: 0.10.0
libtpu: 0.0.40
codegen_flags: <defaults>
</compile_context>

<pallas_src>
import functools

import numpy as np
import jax
import jax.numpy as jnp
from jax.experimental import pallas as pl
from jax.experimental.pallas import tpu as pltpu


# ----------------------------------------------------------------------------
# Kernel
# ----------------------------------------------------------------------------
def _apply_activation(y, activation):
    if activation == "tanh":
        return jnp.tanh(y)
    if activation == "relu":
        return jnp.maximum(y, 0.0)
    if activation == "sigmoid":
        return jax.nn.sigmoid(y)
    if activation == "elu":
        return jnp.where(y > 0, y, jnp.expm1(jnp.minimum(y, 0.0)))
    if activation == "leaky_relu":
        return jnp.where(y > 0, y, 0.01 * y)
    # any other string -> identity (matches the PyTorch module's fallthrough)
    return y


def _dense_kernel(x_ref, w_ref, b_ref, o_ref, *, activation):
    """Accumulate directly into the resident f32 output block (k innermost)."""
    k = pl.program_id(2)

    @pl.when(k == 0)
    def _init():
        o_ref[...] = jnp.zeros_like(o_ref)

    # Hot loop: MXU matmul with f32 accumulation into the output block.
    o_ref[...] += jnp.dot(x_ref[...], w_ref[...],
                          preferred_element_type=jnp.float32)

    @pl.when(k == pl.num_programs(2) - 1)
    def _finalize():
        o_ref[...] = _apply_activation(o_ref[...] + b_ref[...], activation)


# ----------------------------------------------------------------------------
# Tiling helpers
# ----------------------------------------------------------------------------
def _round_up(v, m):
    return (v + m - 1) // m * m


def _vmem_capacity_bytes():
    try:
        info = pltpu.get_tpu_info()
        cap = getattr(info, "vmem_capacity_bytes", None)
        if cap:
            return int(cap)
    except Exception:
        pass
    return 64 * 1024 * 1024  # conservative default: v7x per-TensorCore VMEM


def _tile_targets():
    """(tm_target, tn_target, tk_target, vmem_capacity) per TPU generation."""
    cap = _vmem_capacity_bytes()
    kind = ""
    try:
        kind = jax.devices()[0].device_kind.lower()
    except Exception:
        pass
    if cap < 96 * 1024 * 1024:           # v7x: 64 MiB / TC, ~310 flop/B needed
        return 1024, 1024, 512, cap
    if "v5" in kind:                     # v5e: ~240 flop/B suffices
        return 768, 768, 512, cap
    return 1024, 2048, 512, cap          # v6e (128 MiB VMEM, ~680 flop/B)


def _pick_tile(dim, target, align):
    """Pick a tile for `dim` (already a multiple of `align`):
    the whole dim if it fits inside `target`, otherwise the multiple of `align`
    in [target/2, target] that minimizes round_up(dim, tile) (padding waste)."""
    target = max(target, align)
    if dim <= target:
        return dim
    lo = max(align, (target // 2) // align * align)
    best_t, best_pad = None, None
    t = target // align * align
    while t >= lo:
        padded = _round_up(dim, t)
        if best_pad is None or padded < best_pad:
            best_pad, best_t = padded, t
        t -= align
    return best_t


# ----------------------------------------------------------------------------
# Layer wrapper
# ----------------------------------------------------------------------------
class DenseLayer:
    """y = activation(x @ weight.T + bias). Weight cast/pad done once at init."""

    def __init__(self, weight, bias, activation="tanh",
                 compute_dtype=jnp.bfloat16,
                 tm_target=None, tn_target=None, tk_target=None):
        weight = jnp.asarray(weight)   # (out_features, in_features)
        bias = jnp.asarray(bias)       # (out_features,)
        self.activation = activation
        self.compute_dtype = compute_dtype

        dm, dn, dk, cap = _tile_targets()
        self.tm_target = tm_target or dm
        tn_target = tn_target or dn
        tk_target = tk_target or dk
        self.vmem_cap = cap

        n_out, k_in = weight.shape
        self.n_out, self.k_in = n_out, k_in

        # Lane-dense padding for N/K (multiples of 128) + tile choice.
        kp = _round_up(k_in, 128)
        npad = _round_up(n_out, 128)
        self.tk = _pick_tile(kp, tk_target, 128)
        self.tn = _pick_tile(npad, tn_target, 128)
        self.k_pad = _round_up(kp, self.tk)
        self.n_pad = _round_up(npad, self.tn)

        # Hoisted per-layer work: transpose to (K, N), cast, zero-pad once.
        w_t = weight.T.astype(compute_dtype)
        if (self.k_pad, self.n_pad) != w_t.shape:
            w_t = jnp.pad(w_t, ((0, self.k_pad - k_in), (0, self.n_pad - n_out)))
        self.w_p = w_t

        b_f = bias.astype(jnp.float32).reshape(1, -1)
        if self.n_pad != n_out:
            b_f = jnp.pad(b_f, ((0, 0), (0, self.n_pad - n_out)))
        self.b_p = b_f

    def __call__(self, x):
        M, K = x.shape
        assert K == self.k_in, "input feature dim mismatch"
        tn, tk = self.tn, self.tk
        kp, npad = self.k_pad, self.n_pad
        cdt = self.compute_dtype
        in_bytes = np.dtype(cdt).itemsize

        # bf16 packs 2 rows per sublane -> align M to 16; f32 -> 8.
        m_align = 16 if in_bytes == 2 else 8
        mp = _round_up(M, m_align)
        tm = _pick_tile(mp, self.tm_target, m_align)   # small batch: tm == mp
        mp = _round_up(mp, tm)

        # Cast / pad x only when actually needed (static checks).
        x_c = x if x.dtype == np.dtype(cdt) else x.astype(cdt)
        if x_c.shape != (mp, kp):
            x_c = jnp.pad(x_c, ((0, mp - M), (0, kp - K)))

        grid = (mp // tm, npad // tn, kp // tk)

        # Double-buffered x / W / bias inputs + resident f32 output block.
        buf_bytes = (2 * (tm * tk + tk * tn) * in_bytes
                     + 2 * tn * 4
                     + 2 * tm * tn * 4)
        vmem_limit = max(buf_bytes + (8 << 20), 32 << 20)
        vmem_limit = min(vmem_limit, int(self.vmem_cap * 0.9))

        cost = pl.CostEstimate(
            flops=2 * mp * npad * kp,
            transcendentals=(mp * npad
                             if self.activation in ("tanh", "sigmoid", "elu")
                             else 0),
            # x is re-streamed once per output-column tile, W once per row tile.
            bytes_accessed=(mp * kp * in_bytes) * grid[1]
                           + (kp * npad * in_bytes) * grid[0]
                           + mp * npad * 4
                           + npad * 4 * grid[0],
        )

        kernel = functools.partial(_dense_kernel, activation=self.activation)
        out_p = pl.pallas_call(
            kernel,
            out_shape=jax.ShapeDtypeStruct((mp, npad), jnp.float32),
            grid_spec=pltpu.PrefetchScalarGridSpec(
                num_scalar_prefetch=0,
                grid=grid,
                in_specs=[
                    pl.BlockSpec((tm, tk), lambda i, j, k: (i, k)),   # x tile
                    pl.BlockSpec((tk, tn), lambda i, j, k: (k, j)),   # W tile
                    pl.BlockSpec((1, tn), lambda i, j, k: (0, j)),    # bias tile
                ],
                out_specs=pl.BlockSpec((tm, tn), lambda i, j, k: (i, j)),
            ),
            compiler_params=pltpu.CompilerParams(
                dimension_semantics=("parallel", "parallel", "arbitrary"),
                vmem_limit_bytes=vmem_limit,
            ),
            cost_estimate=cost,
        )(x_c, self.w_p, self.b_p)

        return out_p[:M, :self.n_out]


def dense_layer(x, weight_t, bias, activation="tanh",
                compute_dtype=jnp.bfloat16, **tile_overrides):
    """One-shot convenience wrapper. weight_t is (in_features, out_features)."""
    layer = DenseLayer(jnp.asarray(weight_t).T, bias, activation,
                       compute_dtype, **tile_overrides)
    return layer(x)


# ----------------------------------------------------------------------------
# Self-test
# ----------------------------------------------------------------------------
if __name__ == "__main__":
    key = jax.random.PRNGKey(0)

    # --- Test 1: PINN-sized DenseLayer (small batch, tanh), bf16 MXU path ----
    batch, in_features, out_features = 8, 32, 16
    kx, kw, kb, k2 = jax.random.split(key, 4)
    x = jax.random.normal(kx, (batch, in_features), dtype=jnp.float32)
    bound = 1.0 / (in_features ** 0.5)
    weight = jax.random.uniform(kw, (out_features, in_features),
                                minval=-bound, maxval=bound, dtype=jnp.float32)
    bias = jax.random.uniform(kb, (out_features,),
                              minval=-bound, maxval=bound, dtype=jnp.float32)

    layer = DenseLayer(weight, bias, activation="tanh")
    out = jax.block_until_ready(layer(x))
    # bf16 compute path compares against the same-cast reference (documented
    # precision deviation from PyTorch's f32 nn.Linear).
    x_bf = x.astype(jnp.bfloat16).astype(jnp.float32)
    w_bf = weight.astype(jnp.bfloat16).astype(jnp.float32)
    ref = jnp.tanh(x_bf @ w_bf.T + bias[None, :])
    assert out.shape == (batch, out_features)
    assert jnp.allclose(out, ref, atol=2e-3, rtol=2e-3), "bf16 path mismatch"

    # --- Test 2: f32 compute path (PyTorch parity flag) -----------------------
    layer_f32 = DenseLayer(weight, bias, activation="tanh",
                           compute_dtype=jnp.float32)
    out_f32 = jax.block_until_ready(layer_f32(x))
    ref_f32 = jnp.tanh(x @ weight.T + bias[None, :])
    assert jnp.allclose(out_f32, ref_f32, atol=2e-2, rtol=2e-2), "f32 path mismatch"

    # --- Test 3: multi-step K accumulation, larger shapes (relu) --------------
    M2, K2, N2 = 384, 1024, 384
    ka, kb2, kc = jax.random.split(k2, 3)
    x2 = jax.random.normal(ka, (M2, K2), dtype=jnp.float32)
    w2 = jax.random.normal(kb2, (N2, K2), dtype=jnp.float32) * (1.0 / K2 ** 0.5)
    b2 = jax.random.normal(kc, (N2,), dtype=jnp.float32) * 0.1
    layer2 = DenseLayer(w2, b2, activation="relu")
    out2 = jax.block_until_ready(layer2(x2))
    x2_bf = x2.astype(jnp.bfloat16).astype(jnp.float32)
    w2_bf = w2.astype(jnp.bfloat16).astype(jnp.float32)
    ref2 = jnp.maximum(x2_bf @ w2_bf.T + b2[None, :], 0.0)
    assert out2.shape == (M2, N2)
    assert jnp.allclose(out2, ref2, atol=5e-3, rtol=5e-3), "multi-K mismatch"

    # --- Test 4: full 3-D (i, j, k) grid via small tile overrides (elu) -------
    M3, K3, N3 = 256, 512, 384
    kd, ke, kf = jax.random.split(ka, 3)
    x3 = jax.random.normal(kd, (M3, K3), dtype=jnp.float32)
    w3 = jax.random.normal(ke, (N3, K3), dtype=jnp.float32) * (1.0 / K3 ** 0.5)
    b3 = jax.random.normal(kf, (N3,), dtype=jnp.float32) * 0.1
    layer3 = DenseLayer(w3, b3, activation="elu",
                        tm_target=128, tn_target=128, tk_target=256)
    out3 = jax.block_until_ready(layer3(x3))
    x3_bf = x3.astype(jnp.bfloat16).astype(jnp.float32)
    w3_bf = w3.astype(jnp.bfloat16).astype(jnp.float32)
    y3 = x3_bf @ w3_bf.T + b3[None, :]
    ref3 = jnp.where(y3 > 0, y3, jnp.expm1(jnp.minimum(y3, 0.0)))
    assert jnp.allclose(out3, ref3, atol=5e-3, rtol=5e-3), "3-D grid mismatch"

    print("KERNEL_OK")
</pallas_src>

<mosaic_0001>
module attributes {stable_mosaic.version = 11 : i64} {
  func.func @_dense_kernel(%arg0: i32, %arg1: i32, %arg2: i32, %arg3: memref<16x128xbf16, #tpu.memory_space<vmem>>, %arg4: memref<128x128xbf16, #tpu.memory_space<vmem>>, %arg5: memref<1x128xf32, #tpu.memory_space<vmem>>, %arg6: memref<16x128xf32, #tpu.memory_space<vmem>>) attributes {dimension_semantics = [#tpu.dimension_semantics<parallel>, #tpu.dimension_semantics<parallel>, #tpu.dimension_semantics<arbitrary>], iteration_bounds = array<i64: 1, 1, 1>, scalar_prefetch = 0 : i64, scratch_operands = 0 : i64, tpu.core_type = #tpu.core_type<tc>, window_params = [{transform_indices = @transform_0, window_bounds = array<i64: 16, 128>}, {transform_indices = @transform_1, window_bounds = array<i64: 128, 128>}, {transform_indices = @transform_2, window_bounds = array<i64: 1, 128>}, {transform_indices = @transform_3, window_bounds = array<i64: 16, 128>}]} {
    %c0_i32 = arith.constant 0 : i32
    %0 = arith.cmpi eq, %arg2, %c0_i32 : i32
    %1 = arith.extui %0 : i1 to i32
    %c0_i32_0 = arith.constant 0 : i32
    %2 = arith.cmpi ne, %1, %c0_i32_0 : i32
    scf.if %2 {
      %cst_10 = arith.constant 0.000000e+00 : f32
      %12 = vector.broadcast %cst_10 : f32 to vector<16x128xf32>
      %c0_11 = arith.constant 0 : index
      %c0_12 = arith.constant 0 : index
      %13 = vector.load %arg6[%c0_11, %c0_12] : memref<16x128xf32, #tpu.memory_space<vmem>>, vector<16x128xf32>
      tpu.vector_store %arg6[%c0_11, %c0_12], %12 {strides = array<i32>} : memref<16x128xf32, #tpu.memory_space<vmem>>, vector<16x128xf32>,
    } else {
    }
    %c0 = arith.constant 0 : index
    %c0_1 = arith.constant 0 : index
    %3 = vector.load %arg6[%c0, %c0_1] : memref<16x128xf32, #tpu.memory_space<vmem>>, vector<16x128xf32>
    %c0_2 = arith.constant 0 : index
    %c0_3 = arith.constant 0 : index
    %4 = vector.load %arg3[%c0_2, %c0_3] : memref<16x128xbf16, #tpu.memory_space<vmem>>, vector<16x128xbf16>
    %c0_4 = arith.constant 0 : index
    %c0_5 = arith.constant 0 : index
    %5 = vector.load %arg4[%c0_4, %c0_5] : memref<128x128xbf16, #tpu.memory_space<vmem>>, vector<128x128xbf16>
    %cst = arith.constant dense<0.000000e+00> : vector<16x128xf32>
    %6 = tpu.matmul %4, %5, %cst {dimension_numbers = #tpu.dot_dimension_numbers<[1], [0], [0], [1], [0, 0, 1, 1], [], []>} : vector<16x128xbf16>, vector<128x128xbf16>, vector<16x128xf32> -> vector<16x128xf32>
    %7 = arith.addf %3, %6 : vector<16x128xf32>
    %c0_6 = arith.constant 0 : index
    %c0_7 = arith.constant 0 : index
    %8 = vector.load %arg6[%c0_6, %c0_7] : memref<16x128xf32, #tpu.memory_space<vmem>>, vector<16x128xf32>
    tpu.vector_store %arg6[%c0_6, %c0_7], %7 {strides = array<i32>} : memref<16x128xf32, #tpu.memory_space<vmem>>, vector<16x128xf32>,
    %c0_i32_8 = arith.constant 0 : i32
    %9 = arith.cmpi eq, %arg2, %c0_i32_8 : i32
    %10 = arith.extui %9 : i1 to i32
    %c0_i32_9 = arith.constant 0 : i32
    %11 = arith.cmpi ne, %10, %c0_i32_9 : i32
    scf.if %11 {
      %c0_10 = arith.constant 0 : index
      %c0_11 = arith.constant 0 : index
      %12 = vector.load %arg6[%c0_10, %c0_11] : memref<16x128xf32, #tpu.memory_space<vmem>>, vector<16x128xf32>
      %c0_12 = arith.constant 0 : index
      %c0_13 = arith.constant 0 : index
      %13 = vector.load %arg5[%c0_12, %c0_13] : memref<1x128xf32, #tpu.memory_space<vmem>>, vector<1x128xf32>
      %14 = vector.broadcast %13 : vector<1x128xf32> to vector<16x128xf32>
      %15 = arith.addf %12, %14 : vector<16x128xf32>
      %16 = math.tanh %15 : vector<16x128xf32>
      %c0_14 = arith.constant 0 : index
      %c0_15 = arith.constant 0 : index
      %17 = vector.load %arg6[%c0_14, %c0_15] : memref<16x128xf32, #tpu.memory_space<vmem>>, vector<16x128xf32>
      tpu.vector_store %arg6[%c0_14, %c0_15], %16 {strides = array<i32>} : memref<16x128xf32, #tpu.memory_space<vmem>>, vector<16x128xf32>,
    } else {
    }
    return
  }
  func.func @transform_0(%arg0: i32, %arg1: i32, %arg2: i32) -> (i32, i32) {
    %c0_i32 = arith.constant 0 : i32
    return %arg0, %arg2 : i32, i32
  }
  func.func @transform_1(%arg0: i32, %arg1: i32, %arg2: i32) -> (i32, i32) {
    %c0_i32 = arith.constant 0 : i32
    return %arg2, %arg1 : i32, i32
  }
  func.func @transform_2(%arg0: i32, %arg1: i32, %arg2: i32) -> (i32, i32) {
    %c0_i32 = arith.constant 0 : i32
    %c0_i32_0 = arith.constant 0 : i32
    return %c0_i32, %arg1 : i32, i32
  }
  func.func @transform_3(%arg0: i32, %arg1: i32, %arg2: i32) -> (i32, i32) {
    %c0_i32 = arith.constant 0 : i32
    return %arg0, %arg1 : i32, i32
  }
}

</mosaic_0001>

<bundles_post_ra>
// kernel: tpu_custom_call.1
= control target key start
LH: loop header
LB: loop body
LE: loop exit
PB: predicated region body
PF: predicated region fallthrough
CT: control target
= control target key end

     0   :  { %8 = vsyncpa [#allocation3], 0  ;;  %s406_s0 = inlined_call_operand.hbm [shape: bf16[16,128], index: 0, kind: input, shape index: {}]   ;;  %s407_s1 = inlined_call_operand.hbm [shape: bf16[128,128], index: 1, kind: input, shape index: {}]   ;;  %s408_s2 = inlined_call_operand.vmem [shape: f32[1,128], index: 2, kind: input, shape index: {}]   ;;  %s409_s3 = inlined_call_operand.hbm [shape: f32[16,128], index: 3, kind: output, shape index: {}]  }
   0x1   :  { %9 = vsyncpa [#allocation6], 0 }
   0x2   :  { %10 = vsyncpa [#allocation4], 0  ;;  %s338_s12 = smov [#allocation2]   ;;  %s266_s16 = scalar_lea.hbm %s406_s0, 128 }
   0x3   :  { %s16_s13 = sshll.u32 %s338_s12, 4  ;;  %p267_p0 = scmp.ne.s32.totalorder %s406_s0, %s266_s16  ;;  %s17_s13 = int_to_ptr.vmem [resolvable:$true] %s16_s13 }
   0x4   :  { %p270_p1 = scmp.lt.u32.totalorder %s266_s16, %s406_s0 }
   0x6   :  { %p272_p2 = pnand %p270_p1, %p267_p0 }
   0x8   :  { %275 = shalt.err (!%p272_p2)
}
   0x9   :  { %s276_s21 = scalar_lea.vmem %s17_s13, 128  ;;  %p281_p4 = scmp.lt.s32.totalorder %s17_s13, %s17_s13 }
   0xa   :  { %p277_p3 = scmp.ne.s32.totalorder %s17_s13, %s276_s21  ;;  %p282_p5 = scmp.lt.s32.totalorder %s276_s21, %s276_s21 }
   0xc   :  { %p283_p6 = por %p282_p5, %p281_p4 }
   0xe   :  { %p284_p7 = pnand %p283_p6, %p277_p3 }
  0x10   :  { %287 = shalt.err (!%p284_p7)
}
  0x11   :  { %s339_s22 = smov 64   ;;  %s340_s23 = smov 4  }
  0x12   :  { %22 = dma.hbm_to_vmem [thread:$0]  %s406_s0, 128, %s17_s13, [#allocation3], %s339_s22, %s339_s22, %s340_s23  }
  0x13   :  { %s341_s26 = smov [#allocation5]   ;;  %s288_s30 = scalar_lea.hbm %s407_s1, 1024 }
  0x14   :  { %s28_s27 = sshll.u32 %s341_s26, 4  ;;  %p289_p8 = scmp.ne.s32.totalorder %s407_s1, %s288_s30  ;;  %s29_s27 = int_to_ptr.vmem [resolvable:$true] %s28_s27 }
  0x15   :  { %p292_p9 = scmp.lt.u32.totalorder %s288_s30, %s407_s1 }
  0x17   :  { %p294_p10 = pnand %p292_p9, %p289_p8 }
  0x19   :  { %297 = shalt.err (!%p294_p10)
}
  0x1a   :  { %s298_s8 = scalar_lea.vmem %s29_s27, 1024  ;;  %p303_p12 = scmp.lt.s32.totalorder %s29_s27, %s29_s27 }
  0x1b   :  { %p299_p11 = scmp.ne.s32.totalorder %s29_s27, %s298_s8  ;;  %p304_p13 = scmp.lt.s32.totalorder %s298_s8, %s298_s8 }
  0x1d   :  { %p305_p0 = por %p304_p13, %p303_p12 }
  0x1f   :  { %p306_p1 = pnand %p305_p0, %p299_p11 }
  0x21   :  { %309 = shalt.err (!%p306_p1)
}
  0x22   :  { %34 = dma.hbm_to_vmem [thread:$0]  %s407_s1, 1024, %s29_s27, [#allocation6], %s339_s22, %s339_s22, %s340_s23  }
  0x23   :  { %332 = dma.done.wait [#allocation3], 128  }
  0x24   :  { %333 = vsyncadd [#allocation3], 4294967168 }
  0x25   :  { %334 = dma.done.wait [#allocation6], 1024  }
  0x26   :  { %335 = vsyncadd [#allocation6], 4294966272  ;;  %v342_v0 = vmov 0.0   ;;  %vm343_vm0 = vmmov 0   ;;  %v253_v1 = vld [vmem:[#allocation5] sm:$0xff]   ;;  %v254_v2 = vld [vmem:[#allocation5 + $0x8] sm:$0xff]  }
  0x27   :  { %224 = vmatprep.subr.bf16.mxu0 %v342_v0  ;;  %240 = vmatprep.mubr.msk.bf16.mxu0 %vm343_vm0, %v342_v0  ;;  %v255_v3 = vld [vmem:[#allocation5 + $0x10] sm:$0xff]   ;;  %v256_v4 = vld [vmem:[#allocation5 + $0x18] sm:$0xff]   ;;  %v257_v5 = vld [vmem:[#allocation5 + $0x20] sm:$0xff]   ;;  %s344_s11 = smov [#allocation7]  }
  0x28   :  { %225 = vmatpush3.bf16.msra.mxu0 %v253_v1  ;;  %v258_v6 = vld [vmem:[#allocation5 + $0x28] sm:$0xff]   ;;  %v259_v7 = vld [vmem:[#allocation5 + $0x30] sm:$0xff]   ;;  %v260_v8 = vld [vmem:[#allocation5 + $0x38] sm:$0xff]   ;;  %s192_s12 = sshll.u32 %s344_s11, 4  ;;  %s193_s12 = int_to_ptr.vmem [resolvable:$true] %s192_s12 }
  0x29   :  { %226 = vmatprep.subr.bf16.mxu0 %v342_v0  ;;  %v261_v9 = vld [vmem:[#allocation2] sm:$0xff]   ;;  %s310_s13 = scalar_lea.vmem %s193_s12, 256  ;;  %p315_p3 = scmp.lt.s32.totalorder %s193_s12, %s193_s12 }
  0x2a   :  { %v214_v11 = vld [vmem:[%s408_s2] ss:$0 sm:$0xff]  ;;  %p311_p2 = scmp.ne.s32.totalorder %s193_s12, %s310_s13  ;;  %p316_p4 = scmp.lt.s32.totalorder %s310_s13, %s310_s13 }
  0x2c   :  { %227 = vmatpush3.bf16.msra.mxu0 %v254_v2  ;;  %p317_p5 = por %p316_p4, %p315_p3 }
  0x2d   :  { %228 = vmatprep.subr.bf16.mxu0 %v342_v0 }
  0x2e   :  { %p318_p6 = pnand %p317_p5, %p311_p2 }
  0x30   :  { %229 = vmatpush3.bf16.msra.mxu0 %v255_v3 }
  0x31   :  { %230 = vmatprep.subr.bf16.mxu0 %v342_v0 }
  0x34   :  { %231 = vmatpush3.bf16.msra.mxu0 %v256_v4 }
  0x35   :  { %232 = vmatprep.subr.bf16.mxu0 %v342_v0 }
  0x38   :  { %233 = vmatpush3.bf16.msra.mxu0 %v257_v5 }
  0x39   :  { %234 = vmatprep.subr.bf16.mxu0 %v342_v0 }
  0x3c   :  { %235 = vmatpush3.bf16.msra.mxu0 %v258_v6 }
  0x3d   :  { %236 = vmatprep.subr.bf16.mxu0 %v342_v0 }
  0x40   :  { %237 = vmatpush3.bf16.msra.mxu0 %v259_v7 }
  0x41   :  { %238 = vmatprep.subr.bf16.mxu0 %v342_v0 }
  0x44   :  { %239 = vmatpush3.bf16.msra.mxu0 %v260_v8 }
  0x47   :  { %241 = vmatmul.mubr.bf16.vlgmr.msra.gmra.mrb[0].mxu0 %v261_v9 }
 0x11a   :  { %v158_v10 = vpop.f32.mrb[0].mxu0 }
 0x11b   :  { %v242_v12 = vpop.f32.mrb[1].mxu0  ;;  %v181_v15 = vadd.f32 %v214_v11, %v158_v10 }
 0x11c   :  { %v161_v13 = vpop.f32.mrb[2].mxu0 }
 0x11d   :  { %v243_v14 = vpop.f32.mrb[3].mxu0  ;;  %v182_v16 = vadd.f32 %v214_v11, %v161_v13  ;;  %262 = vtanh.f32 %v181_v15 }
 0x11f   :  { %264 = vtanh.f32 %v182_v16 }
 0x127   :  { %v263_v17 = vpop.eup %262 }
 0x128   :  { %185 = vst [vmem:[#allocation7] sm:$0xff] %v263_v17 }
 0x129   :  { %v265_v18 = vpop.eup %264 }
 0x12a   :  { %186 = vst [vmem:[#allocation7 + $0x8] sm:$0xff] %v265_v18 }
 0x12b   :  { %321 = shalt.err (!%p318_p6)
}
 0x12c   :  { %s322_s15 = scalar_lea.hbm %s409_s3, 256 }
 0x12d   :  { %p323_p7 = scmp.ne.s32.totalorder %s409_s3, %s322_s15  ;;  %p326_p8 = scmp.lt.u32.totalorder %s322_s15, %s409_s3 }
 0x12f   :  { %p328_p9 = pnand %p326_p8, %p323_p7 }
 0x131   :  { %331 = shalt.err (!%p328_p9)
}
 0x132   :  { %s345_s20 = smov 128   ;;  %s346_s21 = smov 8  }
 0x133   :  { %198 = dma.vmem_to_hbm [thread:$0]  %s193_s12, 256, %s409_s3, [#allocation4], %s345_s20, %s345_s20, %s346_s21  }
 0x134   :  { %336 = dma.done.wait [#allocation4], 256  }
 0x135   :  { %337 = vsyncadd [#allocation4], 4294967040 }
 0x136   :  { %202 = vsyncpa [#allocation3], 1 }
 0x137   :  { %203 = vsyncpa [#allocation6], 1 }
 0x138   :  { %204 = vsyncpa [#allocation4], 1 }

</bundles_post_ra>
